<compile_context>
chip_gen: v7x
topology: tpu7x:2x2x1
jax: 0.10.0
libtpu: 0.0.40
codegen_flags: <defaults>
</compile_context>

<pallas_src>
import jax
import jax.numpy as jnp
from jax import lax
from jax.experimental import pallas as pl
from jax.experimental.pallas import tpu as pltpu


def _pick_tile(n, target):
    """Largest divisor of n that is <= target and a multiple of 8 (else n)."""
    if n <= target:
        return n
    for d in range(min(target, n), 7, -1):
        if n % d == 0 and d % 8 == 0:
            return d
    return n


# ----------------------------------------------------------------------------
# Kernel 1: fused Q/K/V projection (1x1 convs == channel matmuls).
# ----------------------------------------------------------------------------
def _qkv_proj_kernel(x_ref, wq_ref, bq_ref, wk_ref, bk_ref, wv_ref, bv_ref,
                     q_ref, k_ref, v_ref):
    # x_ref: (1, Tn, C).  Weights pre-transposed: wq/wk (C, Cqp), wv (C, C), bf16.
    x = x_ref[0].astype(jnp.bfloat16)                                   # (Tn, C)
    q = jnp.dot(x, wq_ref[...], preferred_element_type=jnp.float32) + bq_ref[...]
    k = jnp.dot(x, wk_ref[...], preferred_element_type=jnp.float32) + bk_ref[...]
    v = jnp.dot(x, wv_ref[...], preferred_element_type=jnp.float32) + bv_ref[...]
    q_ref[0] = q.astype(q_ref.dtype)
    k_ref[0] = k.astype(k_ref.dtype)
    v_ref[0] = v.astype(v_ref.dtype)


# ----------------------------------------------------------------------------
# Kernel 2: flash-style attention + gamma-scaled residual.
# ----------------------------------------------------------------------------
def _flash_attn_kernel(q_ref, k_ref, v_ref, x_ref, gamma_ref, out_ref,
                       m_ref, l_ref, acc_ref):
    ki = pl.program_id(2)

    @pl.when(ki == 0)
    def _():
        m_ref[...] = jnp.full_like(m_ref, -jnp.inf)
        l_ref[...] = jnp.zeros_like(l_ref)
        acc_ref[...] = jnp.zeros_like(acc_ref)

    q = q_ref[0]                                   # (Tq, Cqp) bf16
    k = k_ref[0]                                   # (Tk, Cqp) bf16
    v = v_ref[0]                                   # (Tk, C)   bf16

    # scores = q @ k^T without materializing a transpose (contract last dims).
    s = lax.dot_general(q, k, dimension_numbers=(((1,), (1,)), ((), ())),
                        preferred_element_type=jnp.float32)            # (Tq, Tk)

    m_prev = m_ref[...]
    m_new = jnp.maximum(m_prev, jnp.max(s, axis=-1, keepdims=True))
    alpha = jnp.exp(m_prev - m_new)
    p = jnp.exp(s - m_new)
    l_ref[...] = alpha * l_ref[...] + jnp.sum(p, axis=-1, keepdims=True)
    acc_ref[...] = alpha * acc_ref[...] + jnp.dot(
        p.astype(jnp.bfloat16), v, preferred_element_type=jnp.float32)
    m_ref[...] = m_new

    @pl.when(ki == pl.num_programs(2) - 1)
    def _():
        gamma = gamma_ref[0, 0]                    # scalar from SMEM
        inv_l = pl.reciprocal(l_ref[...], approx=True)
        x = x_ref[0].astype(jnp.float32)
        out_ref[0] = (gamma * (acc_ref[...] * inv_l) + x).astype(out_ref.dtype)


# ----------------------------------------------------------------------------
# Wrapper (NLC layout).
# ----------------------------------------------------------------------------
def attention_pallas(x_nlc, wq, bq, wk, bk, wv, bv, gamma,
                     *, block_q=256, block_k=512):
    """x_nlc: (B, N, C).  Weights in PyTorch Conv2d layout: wq/wk (Cq, C), wv (C, C)."""
    B, N, C = x_nlc.shape
    Cq = wq.shape[0]
    Cqp = ((Cq + 127) // 128) * 128                 # pad Q/K channels to 128 lanes

    # Pre-transpose (no in-kernel .T), zero-pad, cast MXU operands to bf16 once.
    wq_t = jnp.zeros((C, Cqp), jnp.bfloat16).at[:, :Cq].set(wq.T.astype(jnp.bfloat16))
    wk_t = jnp.zeros((C, Cqp), jnp.bfloat16).at[:, :Cq].set(wk.T.astype(jnp.bfloat16))
    wv_t = wv.T.astype(jnp.bfloat16)
    bq_p = jnp.zeros((1, Cqp), jnp.float32).at[:, :Cq].set(bq.astype(jnp.float32))
    bk_p = jnp.zeros((1, Cqp), jnp.float32).at[:, :Cq].set(bk.astype(jnp.float32))
    bv_p = bv.reshape(1, C).astype(jnp.float32)
    gamma_sc = jnp.reshape(gamma, (1, 1)).astype(jnp.float32)

    tq = _pick_tile(N, block_q)
    tk = _pick_tile(N, block_k)
    tn = tq

    # ---- Q/K/V projection ----------------------------------------------------
    q, k, v = pl.pallas_call(
        _qkv_proj_kernel,
        out_shape=(jax.ShapeDtypeStruct((B, N, Cqp), jnp.bfloat16),
                   jax.ShapeDtypeStruct((B, N, Cqp), jnp.bfloat16),
                   jax.ShapeDtypeStruct((B, N, C), jnp.bfloat16)),
        grid_spec=pltpu.PrefetchScalarGridSpec(
            num_scalar_prefetch=0,
            grid=(B, N // tn),
            in_specs=[
                pl.BlockSpec((1, tn, C), lambda b, n: (b, n, 0)),   # x row tile
                pl.BlockSpec((C, Cqp), lambda b, n: (0, 0)),        # Wq^T (padded)
                pl.BlockSpec((1, Cqp), lambda b, n: (0, 0)),        # bq (padded)
                pl.BlockSpec((C, Cqp), lambda b, n: (0, 0)),        # Wk^T (padded)
                pl.BlockSpec((1, Cqp), lambda b, n: (0, 0)),        # bk (padded)
                pl.BlockSpec((C, C), lambda b, n: (0, 0)),          # Wv^T
                pl.BlockSpec((1, C), lambda b, n: (0, 0)),          # bv
            ],
            out_specs=(
                pl.BlockSpec((1, tn, Cqp), lambda b, n: (b, n, 0)),
                pl.BlockSpec((1, tn, Cqp), lambda b, n: (b, n, 0)),
                pl.BlockSpec((1, tn, C), lambda b, n: (b, n, 0)),
            ),
        ),
        compiler_params=pltpu.CompilerParams(
            dimension_semantics=("parallel", "parallel"),
            vmem_limit_bytes=32 * 1024 * 1024),
    )(x_nlc, wq_t, bq_p, wk_t, bk_p, wv_t, bv_p)

    # ---- flash attention + residual -------------------------------------------
    out = pl.pallas_call(
        _flash_attn_kernel,
        out_shape=jax.ShapeDtypeStruct((B, N, C), x_nlc.dtype),
        grid_spec=pltpu.PrefetchScalarGridSpec(
            num_scalar_prefetch=0,
            grid=(B, N // tq, N // tk),
            in_specs=[
                pl.BlockSpec((1, tq, Cqp), lambda b, qi, ki: (b, qi, 0)),  # Q tile
                pl.BlockSpec((1, tk, Cqp), lambda b, qi, ki: (b, ki, 0)),  # K tile
                pl.BlockSpec((1, tk, C), lambda b, qi, ki: (b, ki, 0)),    # V tile
                pl.BlockSpec((1, tq, C), lambda b, qi, ki: (b, qi, 0)),    # x (residual)
                pl.BlockSpec(memory_space=pltpu.MemorySpace.SMEM),          # gamma
            ],
            out_specs=pl.BlockSpec((1, tq, C), lambda b, qi, ki: (b, qi, 0)),
            scratch_shapes=[
                pltpu.VMEM((tq, 1), jnp.float32),   # running max m
                pltpu.VMEM((tq, 1), jnp.float32),   # running sum l
                pltpu.VMEM((tq, C), jnp.float32),   # accumulator
            ],
        ),
        compiler_params=pltpu.CompilerParams(
            dimension_semantics=("parallel", "parallel", "arbitrary"),
            vmem_limit_bytes=32 * 1024 * 1024),
    )(q, k, v, x_nlc, gamma_sc)
    return out


def attention_forward_nchw(x_nchw, params, **kwargs):
    """Public API matching the PyTorch module: x is NCHW."""
    B, C, H, W = x_nchw.shape
    x_nlc = jnp.transpose(x_nchw, (0, 2, 3, 1)).reshape(B, H * W, C)
    out_nlc = attention_pallas(x_nlc,
                               params["wq"], params["bq"],
                               params["wk"], params["bk"],
                               params["wv"], params["bv"],
                               params["gamma"], **kwargs)
    return jnp.transpose(out_nlc.reshape(B, H, W, C), (0, 3, 1, 2))


def attention_reference_nchw(x_nchw, params):
    """Pure-JAX f32 reference mirroring the PyTorch forward exactly (NCHW)."""
    B, C, H, W = x_nchw.shape
    N = H * W
    x_flat = x_nchw.reshape(B, C, N)
    q = jnp.einsum("oc,bcn->bon", params["wq"], x_flat) + params["bq"][None, :, None]
    k = jnp.einsum("oc,bcn->bon", params["wk"], x_flat) + params["bk"][None, :, None]
    v = jnp.einsum("oc,bcn->bon", params["wv"], x_flat) + params["bv"][None, :, None]
    attn = jnp.einsum("bdi,bdj->bij", q, k)
    attn = jax.nn.softmax(attn, axis=-1)
    out = jnp.einsum("bcj,bij->bci", v, attn)
    out = out.reshape(B, C, H, W)
    return params["gamma"] * out + x_nchw


def init_params(key, in_channels, attention_dim_div=8):
    cq = in_channels // attention_dim_div
    ks = jax.random.split(key, 6)
    scale = 1.0 / jnp.sqrt(in_channels)
    return {
        "wq": jax.random.uniform(ks[0], (cq, in_channels), jnp.float32, -scale, scale),
        "bq": jax.random.uniform(ks[1], (cq,), jnp.float32, -scale, scale),
        "wk": jax.random.uniform(ks[2], (cq, in_channels), jnp.float32, -scale, scale),
        "bk": jax.random.uniform(ks[3], (cq,), jnp.float32, -scale, scale),
        "wv": jax.random.uniform(ks[4], (in_channels, in_channels), jnp.float32, -scale, scale),
        "bv": jax.random.uniform(ks[5], (in_channels,), jnp.float32, -scale, scale),
        # Module initializes gamma to zero (nn.Parameter(torch.zeros(1))).
        "gamma": jnp.zeros((1,), jnp.float32),
    }


if __name__ == "__main__":
    key = jax.random.PRNGKey(0)
    k_x, k_p = jax.random.split(key)

    # in_channels=32, attention_dim_div=8 -> Cq=4; N = 16*16 = 256
    B, C, H, W = 2, 32, 16, 16
    x = jax.random.normal(k_x, (B, C, H, W), jnp.float32)
    params = init_params(k_p, C, attention_dim_div=8)

    # Faithful run: gamma == 0 as in the module's __init__ (output == input).
    out = jax.block_until_ready(
        attention_forward_nchw(x, params, block_q=128, block_k=128))
    ref = attention_reference_nchw(x, params)
    assert jnp.allclose(out, ref, atol=1e-5, rtol=1e-5)

    # Nonzero gamma so the attention path is actually exercised.
    # bf16 MXU operands + approx reciprocal -> relaxed tolerance.
    params_nz = dict(params, gamma=jnp.full((1,), 0.5, jnp.float32))
    out_nz = jax.block_until_ready(
        attention_forward_nchw(x, params_nz, block_q=128, block_k=128))
    ref_nz = attention_reference_nchw(x, params_nz)
    assert jnp.allclose(out_nz, ref_nz, atol=2e-2, rtol=2e-2)

    print("KERNEL_OK")
</pallas_src>

<mosaic_0001>
module attributes {stable_mosaic.version = 11 : i64} {
  func.func @_qkv_proj_kernel(%arg0: i32, %arg1: i32, %arg2: memref<1x128x32xf32, #tpu.memory_space<vmem>>, %arg3: memref<32x128xbf16, #tpu.memory_space<vmem>>, %arg4: memref<1x128xf32, #tpu.memory_space<vmem>>, %arg5: memref<32x128xbf16, #tpu.memory_space<vmem>>, %arg6: memref<1x128xf32, #tpu.memory_space<vmem>>, %arg7: memref<32x32xbf16, #tpu.memory_space<vmem>>, %arg8: memref<1x32xf32, #tpu.memory_space<vmem>>, %arg9: memref<1x128x128xbf16, #tpu.memory_space<vmem>>, %arg10: memref<1x128x128xbf16, #tpu.memory_space<vmem>>, %arg11: memref<1x128x32xbf16, #tpu.memory_space<vmem>>) attributes {dimension_semantics = [#tpu.dimension_semantics<parallel>, #tpu.dimension_semantics<parallel>], iteration_bounds = array<i64: 2, 2>, scalar_prefetch = 0 : i64, scratch_operands = 0 : i64, tpu.core_type = #tpu.core_type<tc>, window_params = [{transform_indices = @transform_0, window_bounds = array<i64: 1, 128, 32>}, {pipeline_mode = #tpu.pipeline_mode<synchronous>, transform_indices = @transform_1, window_bounds = array<i64: 32, 128>}, {pipeline_mode = #tpu.pipeline_mode<synchronous>, transform_indices = @transform_2, window_bounds = array<i64: 1, 128>}, {pipeline_mode = #tpu.pipeline_mode<synchronous>, transform_indices = @transform_3, window_bounds = array<i64: 32, 128>}, {pipeline_mode = #tpu.pipeline_mode<synchronous>, transform_indices = @transform_4, window_bounds = array<i64: 1, 128>}, {pipeline_mode = #tpu.pipeline_mode<synchronous>, transform_indices = @transform_5, window_bounds = array<i64: 32, 32>}, {pipeline_mode = #tpu.pipeline_mode<synchronous>, transform_indices = @transform_6, window_bounds = array<i64: 1, 32>}, {transform_indices = @transform_7, window_bounds = array<i64: 1, 128, 128>}, {transform_indices = @transform_8, window_bounds = array<i64: 1, 128, 128>}, {transform_indices = @transform_9, window_bounds = array<i64: 1, 128, 32>}]} {
    %c0 = arith.constant 0 : index
    %c0_0 = arith.constant 0 : index
    %c0_1 = arith.constant 0 : index
    %0 = vector.load %arg2[%c0, %c0_0, %c0_1] : memref<1x128x32xf32, #tpu.memory_space<vmem>>, vector<1x128x32xf32>
    %1 = vector.shape_cast %0 : vector<1x128x32xf32> to vector<128x32xf32>
    %2 = arith.truncf %1 : vector<128x32xf32> to vector<128x32xbf16>
    %c0_2 = arith.constant 0 : index
    %c0_3 = arith.constant 0 : index
    %3 = vector.load %arg3[%c0_2, %c0_3] : memref<32x128xbf16, #tpu.memory_space<vmem>>, vector<32x128xbf16>
    %cst = arith.constant dense<0.000000e+00> : vector<128x128xf32>
    %4 = tpu.matmul %2, %3, %cst {dimension_numbers = #tpu.dot_dimension_numbers<[1], [0], [0], [1], [0, 0, 1, 1], [], []>} : vector<128x32xbf16>, vector<32x128xbf16>, vector<128x128xf32> -> vector<128x128xf32>
    %c0_4 = arith.constant 0 : index
    %c0_5 = arith.constant 0 : index
    %5 = vector.load %arg4[%c0_4, %c0_5] : memref<1x128xf32, #tpu.memory_space<vmem>>, vector<1x128xf32>
    %6 = vector.broadcast %5 : vector<1x128xf32> to vector<128x128xf32>
    %7 = arith.addf %4, %6 : vector<128x128xf32>
    %c0_6 = arith.constant 0 : index
    %c0_7 = arith.constant 0 : index
    %8 = vector.load %arg5[%c0_6, %c0_7] : memref<32x128xbf16, #tpu.memory_space<vmem>>, vector<32x128xbf16>
    %cst_8 = arith.constant dense<0.000000e+00> : vector<128x128xf32>
    %9 = tpu.matmul %2, %8, %cst_8 {dimension_numbers = #tpu.dot_dimension_numbers<[1], [0], [0], [1], [0, 0, 1, 1], [], []>} : vector<128x32xbf16>, vector<32x128xbf16>, vector<128x128xf32> -> vector<128x128xf32>
    %c0_9 = arith.constant 0 : index
    %c0_10 = arith.constant 0 : index
    %10 = vector.load %arg6[%c0_9, %c0_10] : memref<1x128xf32, #tpu.memory_space<vmem>>, vector<1x128xf32>
    %11 = vector.broadcast %10 : vector<1x128xf32> to vector<128x128xf32>
    %12 = arith.addf %9, %11 : vector<128x128xf32>
    %c0_11 = arith.constant 0 : index
    %c0_12 = arith.constant 0 : index
    %13 = vector.load %arg7[%c0_11, %c0_12] : memref<32x32xbf16, #tpu.memory_space<vmem>>, vector<32x32xbf16>
    %cst_13 = arith.constant dense<0.000000e+00> : vector<128x32xf32>
    %14 = tpu.matmul %2, %13, %cst_13 {dimension_numbers = #tpu.dot_dimension_numbers<[1], [0], [0], [1], [0, 0, 1, 1], [], []>} : vector<128x32xbf16>, vector<32x32xbf16>, vector<128x32xf32> -> vector<128x32xf32>
    %c0_14 = arith.constant 0 : index
    %c0_15 = arith.constant 0 : index
    %15 = vector.load %arg8[%c0_14, %c0_15] : memref<1x32xf32, #tpu.memory_space<vmem>>, vector<1x32xf32>
    %16 = vector.broadcast %15 : vector<1x32xf32> to vector<128x32xf32>
    %17 = arith.addf %14, %16 : vector<128x32xf32>
    %18 = arith.truncf %7 : vector<128x128xf32> to vector<128x128xbf16>
    %c0_16 = arith.constant 0 : index
    %c0_17 = arith.constant 0 : index
    %c0_18 = arith.constant 0 : index
    %19 = vector.load %arg9[%c0_16, %c0_17, %c0_18] : memref<1x128x128xbf16, #tpu.memory_space<vmem>>, vector<1x128x128xbf16>
    %20 = vector.shape_cast %19 : vector<1x128x128xbf16> to vector<128x128xbf16>
    %21 = vector.shape_cast %18 : vector<128x128xbf16> to vector<1x128x128xbf16>
    tpu.vector_store %arg9[%c0_16, %c0_17, %c0_18], %21 {strides = array<i32>} : memref<1x128x128xbf16, #tpu.memory_space<vmem>>, vector<1x128x128xbf16>,
    %22 = arith.truncf %12 : vector<128x128xf32> to vector<128x128xbf16>
    %c0_19 = arith.constant 0 : index
    %c0_20 = arith.constant 0 : index
    %c0_21 = arith.constant 0 : index
    %23 = vector.load %arg10[%c0_19, %c0_20, %c0_21] : memref<1x128x128xbf16, #tpu.memory_space<vmem>>, vector<1x128x128xbf16>
    %24 = vector.shape_cast %23 : vector<1x128x128xbf16> to vector<128x128xbf16>
    %25 = vector.shape_cast %22 : vector<128x128xbf16> to vector<1x128x128xbf16>
    tpu.vector_store %arg10[%c0_19, %c0_20, %c0_21], %25 {strides = array<i32>} : memref<1x128x128xbf16, #tpu.memory_space<vmem>>, vector<1x128x128xbf16>,
    %26 = arith.truncf %17 : vector<128x32xf32> to vector<128x32xbf16>
    %c0_22 = arith.constant 0 : index
    %c0_23 = arith.constant 0 : index
    %c0_24 = arith.constant 0 : index
    %27 = vector.load %arg11[%c0_22, %c0_23, %c0_24] : memref<1x128x32xbf16, #tpu.memory_space<vmem>>, vector<1x128x32xbf16>
    %28 = vector.shape_cast %27 : vector<1x128x32xbf16> to vector<128x32xbf16>
    %29 = vector.shape_cast %26 : vector<128x32xbf16> to vector<1x128x32xbf16>
    tpu.vector_store %arg11[%c0_22, %c0_23, %c0_24], %29 {strides = array<i32>} : memref<1x128x32xbf16, #tpu.memory_space<vmem>>, vector<1x128x32xbf16>,
    return
  }
  func.func @transform_0(%arg0: i32, %arg1: i32) -> (i32, i32, i32) {
    %c0_i32 = arith.constant 0 : i32
    %c0_i32_0 = arith.constant 0 : i32
    return %arg0, %arg1, %c0_i32 : i32, i32, i32
  }
  func.func @transform_1(%arg0: i32, %arg1: i32) -> (i32, i32) {
    %c0_i32 = arith.constant 0 : i32
    %c0_i32_0 = arith.constant 0 : i32
    %c0_i32_1 = arith.constant 0 : i32
    return %c0_i32, %c0_i32_0 : i32, i32
  }
  func.func @transform_2(%arg0: i32, %arg1: i32) -> (i32, i32) {
    %c0_i32 = arith.constant 0 : i32
    %c0_i32_0 = arith.constant 0 : i32
    %c0_i32_1 = arith.constant 0 : i32
    return %c0_i32, %c0_i32_0 : i32, i32
  }
  func.func @transform_3(%arg0: i32, %arg1: i32) -> (i32, i32) {
    %c0_i32 = arith.constant 0 : i32
    %c0_i32_0 = arith.constant 0 : i32
    %c0_i32_1 = arith.constant 0 : i32
    return %c0_i32, %c0_i32_0 : i32, i32
  }
  func.func @transform_4(%arg0: i32, %arg1: i32) -> (i32, i32) {
    %c0_i32 = arith.constant 0 : i32
    %c0_i32_0 = arith.constant 0 : i32
    %c0_i32_1 = arith.constant 0 : i32
    return %c0_i32, %c0_i32_0 : i32, i32
  }
  func.func @transform_5(%arg0: i32, %arg1: i32) -> (i32, i32) {
    %c0_i32 = arith.constant 0 : i32
    %c0_i32_0 = arith.constant 0 : i32
    %c0_i32_1 = arith.constant 0 : i32
    return %c0_i32, %c0_i32_0 : i32, i32
  }
  func.func @transform_6(%arg0: i32, %arg1: i32) -> (i32, i32) {
    %c0_i32 = arith.constant 0 : i32
    %c0_i32_0 = arith.constant 0 : i32
    %c0_i32_1 = arith.constant 0 : i32
    return %c0_i32, %c0_i32_0 : i32, i32
  }
  func.func @transform_7(%arg0: i32, %arg1: i32) -> (i32, i32, i32) {
    %c0_i32 = arith.constant 0 : i32
    %c0_i32_0 = arith.constant 0 : i32
    return %arg0, %arg1, %c0_i32 : i32, i32, i32
  }
  func.func @transform_8(%arg0: i32, %arg1: i32) -> (i32, i32, i32) {
    %c0_i32 = arith.constant 0 : i32
    %c0_i32_0 = arith.constant 0 : i32
    return %arg0, %arg1, %c0_i32 : i32, i32, i32
  }
  func.func @transform_9(%arg0: i32, %arg1: i32) -> (i32, i32, i32) {
    %c0_i32 = arith.constant 0 : i32
    %c0_i32_0 = arith.constant 0 : i32
    return %arg0, %arg1, %c0_i32 : i32, i32, i32
  }
}

</mosaic_0001>

<bundles_post_ra>
// kernel: tpu_custom_call.1
= control target key start
LH: loop header
LB: loop body
LE: loop exit
PB: predicated region body
PF: predicated region fallthrough
CT: control target
= control target key end

     0   :  { %s2224_s0 = inlined_call_operand.vmem [shape: f32[2,256,32], index: 0, kind: input, shape index: {}]   ;;  %s2225_s1 = inlined_call_operand.vmem [shape: bf16[32,128], index: 1, kind: input, shape index: {}]   ;;  %s2226_s2 = inlined_call_operand.vmem [shape: f32[1,128], index: 2, kind: input, shape index: {}]   ;;  %s2227_s3 = inlined_call_operand.vmem [shape: bf16[32,128], index: 3, kind: input, shape index: {}]   ;;  %s2228_s4 = inlined_call_operand.vmem [shape: f32[1,128], index: 4, kind: input, shape index: {}]   ;;  %s2229_s5 = inlined_call_operand.vmem [shape: bf16[32,32], index: 5, kind: input, shape index: {}]   ;;  %s2230_s6 = inlined_call_operand.vmem [shape: f32[1,32], index: 6, kind: input, shape index: {}]   ;;  %s2231_s7 = inlined_call_operand.hbm [shape: bf16[2,256,128], index: 7, kind: output, shape index: {0}]   ;;  %s2232_s8 = inlined_call_operand.hbm [shape: bf16[2,256,128], index: 8, kind: output, shape index: {1}]   ;;  %s2233_s9 = inlined_call_operand.vmem [shape: bf16[2,256,32], index: 9, kind: output, shape index: {2}]  }
   0x1   :  { %2239 = sst [smem:[#allocation11_spill]] %s2225_s1 }
   0x2   :  { %15 = vsyncpa [#allocation3], 0 }
   0x3   :  { %17 = vsyncpa [#allocation3 + $0x1], 0 }
   0x4   :  { %18 = vsyncpa [#allocation5], 0 }
   0x5   :  { %20 = vsyncpa [#allocation5 + $0x1], 0  ;;  %s1862_s30 = smov 0   ;;  %s1864_s10 = smov 0  }
   0x6   :  { %s1866_s11 = smov 0   ;;  %s1868_s12 = smov 0  }
   0x7   :  { %s1870_s13 = smov 0   ;;  %s1872_s14 = smov 0  }
   0x8   :  { %s1874_s15 = smov 0   ;;  %s1876_s16 = smov 0  }
   0x9 LB: > { %2240 = sst [smem:[#allocation8_spill]] %s1802_s15  ;;  %s1256_s17 = sadd.s32 4294967295, %s1806_s16   ;;  %s1806_s16 = sphi %s1876_s16, %s26_s16   ;;  %s1802_s15 = sphi %s1874_s15, %s2256_s15   ;;  %s1798_s14 = sphi %s1872_s14, %s2255_s14   ;;  %s1794_s13 = sphi %s1870_s13, %s2248_s13   ;;  %s1790_s12 = sphi %s1868_s12, %s2254_s12   ;;  %s1786_s11 = sphi %s1866_s11, %s2253_s11   ;;  %s1782_s10 = sphi %s1864_s10, %s2252_s10   ;;  %s1778_s30 = sphi %s1862_s30, %s2251_s30  }
   0xa   : > { %s1257_s18 = sadd.s32 4294967294, %s1806_s16   ;;  %s35_s19 = sadd.s32 1, %s1798_s14 }
   0xb   : > { %p36_p0 = scmp.ge.s32.totalorder %s35_s19, 2  ;;  %s38_s20 = sadd.s32 1, %s1802_s15 }
   0xc   : > { %p211_p1 = scmp.ne.s32.totalorder %s1786_s11, %s1782_s10  ;;  %p212_p2 = scmp.eq.s32.totalorder %s1256_s17, 3 }
   0xd   : > { %s2258_s19 = smov (%p36_p0, %s35_s19), 0  ;;  %s2260_s20 = smov (!%p36_p0, %s38_s20), %s1802_s15 }
   0xe   : > { %2241 = sst [smem:[#allocation9_spill]] %s2258_s19  ;;  %s197_s21 = ssub.s32 %s1798_s14, %s2258_s19 }
   0xf   : > { %p1913_p3 = por %p212_p2, %p211_p1  ;;  %p40_p4 = scmp.ge.s32.totalorder %s2260_s20, 2 }
  0x10   : > { %p217_p5 = scmp.ne.s32.totalorder %s1782_s10, %s1778_s30  ;;  %p218_p6 = scmp.eq.s32.totalorder %s1257_s18, 3 }
  0x11   : > { %p1260_p7 = scmp.ge.s32.totalorder %s1806_s16, 1  ;;  %s2262_s20 = smov (%p40_p4, %s2260_s20), 0 }
  0x12   : > { %2243 = sst [smem:[#allocation10_spill]] %s2262_s20  ;;  %p1922_p8 = por %p218_p6, %p217_p5 }
  0x13   : > { %p323_p9 = scmp.lt.s32.totalorder %s1806_s16, 5  ;;  %s196_s24 = ssub.s32 %s1802_s15, %s2262_s20 }
  0x14   : > { %s201_s25 = sadd.s32 1, %s1786_s11  ;;  %s198_s26 = sor.u32 %s197_s21, %s196_s24 }
  0x15   : > { %p324_p10 = pnand %p1260_p7, %p323_p9  ;;  %p199_p11 = scmp.eq.s32.totalorder %s198_s26, 0 }
  0x16   : > { %s2245_s1 = sld [smem:[#allocation11_spill]] (!%p324_p10)  ;;  %s1937_s17 = sshll.u32 (!%p324_p10), %s1790_s12, 4  ;;  %v1676_v2 = vld [vmem:[%s2227_s3] sm:$0xff] (!%p324_p10)   ;;  %vm447_vm0 = vcmask (!%p324_p10), 261120   ;;  %v1678_v11 = vld [vmem:[%s2227_s3 + $0x8] sm:$0xff] (!%p324_p10)   ;;  %vm1033_vm1 = vcmask (!%p324_p10), 257024  }
  0x17   : > { %s1931_s27 = scalar_select %p199_p11, %s1786_s11, %s201_s25  }
  0x18   : > { %327 = sbr.rel (%p324_p10) target bundleno = 315 (0x13b), region = 48  ;;  %p378_p12 = scmp.lt.s32.totalorder (!%p324_p10), %s1794_s13, 1  ;;  %v1677_v3 = vld [vmem:[%s2229_s5] sm:$0xff] (!%p324_p10)   ;;  %v1679_v23 = vld [vmem:[%s2229_s5 + $0x8] sm:$0xff] (!%p324_p10)  }
  0x19   : > { %p380_p13 = scmp.lt.s32.totalorder (!%p324_p10), %s1937_s17, 31  ;;  %v1269_v30 = vld [vmem:[%s2226_s2] ss:$0 sm:$0xff] (!%p324_p10)  ;;  %s1353_s28 = sshll.u32 (!%p324_p10), %s1794_s13, 5 }
  0x1c   : > { %v1674_v0 = vld [vmem:[%s2245_s1] sm:$0xff] (!%p324_p10)   ;;  %v1675_v1 = vld [vmem:[%s2245_s1 + $0x8] sm:$0xff] (!%p324_p10)  }
  0x1d   : > { %1592 = vmatprep.subr.bf16.mxu1 (!%p324_p10), %v1674_v0  ;;  %1532 = vmatprep.subr.bf16.mxu0 (!%p324_p10), %v1674_v0 }
  0x1e   : > { %1594 = vmatpush3.bf16.msra.mxu1 (!%p324_p10), %v1674_v0  ;;  %1533 = vmatpush3.bf16.msra.mxu0 (!%p324_p10), %v1674_v0 }
  0x1f   : > { %s379_s21 = scalar_select %p378_p12, %s1794_s13, 1  ;;  %1593 = vmatprep.subr.bf16.mxu1 %v1675_v1  ;;  %1534 = vmatprep.subr.bf16.mxu0 %v1675_v1 }
  0x20   : > { %s381_s12 = scalar_select %p380_p13, %s1937_s17, 31 }
  0x21   : > { %s1264_s19 = sshll.u32 %s379_s21, 5 }
  0x22   : > { %s1952_s29 = sadd.s32 %s1264_s19, %s381_s12  ;;  %1595 = vmatpush3.bf16.msra.mxu1 %v1675_v1  ;;  %1535 = vmatpush3.bf16.msra.mxu0 %v1675_v1  ;;  %s2010_s12 = sand.u32 1, %s1782_s10  }
  0x23   : > { %s1265_s18 = sshll.u32 %s1952_s29, 3  ;;  %1552 = vmatprep.subr.bf16.mxu1 %v1676_v2  ;;  %1572 = vmatprep.subr.bf16.mxu0 %v1677_v3  ;;  %s2238_s26 = sshll.u32 %s2010_s12, 6 }
  0x24   : > { %s1958_s15 = scalar_lea.vmem %s2224_s0, %s1265_s18  ;;  %s2016_s19 = scalar_lea.vmem [#allocation2], %s2238_s26 }
  0x25   : > { %v400_v4 = vld [vmem:[%s1958_s15] sm:$0xff]  ;;  %v401_v5 = vld [vmem:[%s1958_s15 + $0x8] sm:$0xff]  ;;  %v402_v9 = vld [vmem:[%s1958_s15 + $0x10] sm:$0xff]  ;;  %s2022_s18 = sadd.s32 %s1353_s28, %s1937_s17  ;;  %s1080_s1 = sshll.u32 %s2016_s19, 4  ;;  %s2040_s1 = int_to_ptr.vmem [resolvable:$true] %s1080_s1 }
  0x26   : > { %v408_v6 = vld [vmem:[%s1958_s15 + $0x40] sm:$0xff]  ;;  %v416_v7 = vpack.c.bf16 %v401_v5, %v400_v4  ;;  %v409_v8 = vld [vmem:[%s1958_s15 + $0x48] sm:$0xff]  ;;  %v403_v10 = vld [vmem:[%s1958_s15 + $0x18] sm:$0xff]  ;;  %s2237_s13 = sshll.u32 %s2022_s18, 6  ;;  %s1268_s17 = sshll.u32 %s1952_s29, 2 }
  0x27   : > { %v420_v12 = vpack.c.bf16 %v409_v8, %v408_v6  ;;  %v417_v13 = vpack.c.bf16 %v403_v10, %v402_v9  ;;  %v410_v14 = vld [vmem:[%s1958_s15 + $0x50] sm:$0xff]  ;;  %v411_v15 = vld [vmem:[%s1958_s15 + $0x58] sm:$0xff]  ;;  %v404_v16 = vld [vmem:[%s1958_s15 + $0x20] sm:$0xff]  ;;  %s2038_s25 = scalar_lea.hbm %s2231_s7, %s2237_s13  ;;  %s2054_s24 = scalar_lea.vmem %s2233_s9, %s1268_s17 }
  0x28   : > { %1536 = vmatprep.mubr.msk.bf16.mxu0 %vm447_vm0, %v416_v7  ;;  %v421_v17 = vpack.c.bf16 %v411_v15, %v410_v14  ;;  %v405_v18 = vld [vmem:[%s1958_s15 + $0x28] sm:$0xff]  ;;  %v412_v19 = vld [vmem:[%s1958_s15 + $0x60] sm:$0xff]  ;;  %v406_v24 = vld [vmem:[%s1958_s15 + $0x30] sm:$0xff]  ;;  %s1808_s29 = smov [#allocation2]  }
  0x29   : > { %v413_v20 = vld [vmem:[%s1958_s15 + $0x68] sm:$0xff]  ;;  %1544 = vmatprep.mubr.msk.bf16.mxu1 %vm447_vm0, %v420_v12  ;;  %1537 = vmatmul.mubr.msk.bf16.vlgmr.msra.gmra.mrb[0].mxu0 %vm447_vm0, %v417_v13  ;;  %v418_v21 = vpack.c.bf16 %v405_v18, %v404_v16  ;;  %v407_v25 = vld [vmem:[%s1958_s15 + $0x38] sm:$0xff]  ;;  %v414_v26 = vld [vmem:[%s1958_s15 + $0x70] sm:$0xff]  ;;  %s1684_s28 = sshll.u32 %s1808_s29, 4  ;;  %s1685_s28 = int_to_ptr.vmem [resolvable:$false] %s1684_s28 }
  0x2a   : > { %v422_v22 = vpack.c.bf16 %v413_v20, %v412_v19  ;;  %1545 = vmatmul.mubr.msk.bf16.vlgmr.msra.gmra.mrb[0].mxu1 %vm447_vm0, %v421_v17  ;;  %1573 = vmatpush3.bf16.msra.mxu0 %v1677_v3  ;;  %v415_v27 = vld [vmem:[%s1958_s15 + $0x78] sm:$0xff]  ;;  %v419_v28 = vpack.c.bf16 %v407_v25, %v406_v24  ;;  %v2031_v6 = vld [vmem:[%s2230_s6] ss:$0 sm:$0xff]  ;;  %s1680_s15 = scalar_lea.vmem %s2040_s1, 1024  ;;  %s1686_s17 = scalar_lea.vmem %s1685_s28, 2048 }
  0x2b   : > { %1553 = vmatpush3.bf16.msra.mxu1 %v1676_v2  ;;  %1540 = vmatprep.mubr.msk.bf16.mxu0 %vm447_vm0, %v418_v21  ;;  %v423_v29 = vpack.c.bf16 %v415_v27, %v414_v26  ;;  %v2049_v10 = vld [vmem:[%s2228_s4] ss:$0 sm:$0xff]  ;;  %p1681_p0 = scmp.ne.s32.totalorder %s2040_s1, %s1680_s15  ;;  %p1687_p4 = scmp.lt.s32.totalorder %s2040_s1, %s1685_s28 }
  0x2c   : > { %1548 = vmatprep.mubr.msk.bf16.mxu1 %vm447_vm0, %v422_v22  ;;  %1554 = vmatprep.subr.bf16.mxu1 %v1678_v11  ;;  %p1688_p5 = scmp.lt.s32.totalorder %s1686_s17, %s1680_s15 }
  0x2d   : > { %1574 = vmatprep.subr.bf16.mxu0 %v1679_v23  ;;  %p1682_p1 = pnand %p1681_p0, %p1913_p3 }
  0x2e   : > { %1575 = vmatpush3.bf16.msra.mxu0 %v1679_v23  ;;  %p1689_p6 = por %p1688_p5, %p1687_p4 }
  0x2f   : > { %1555 = vmatpush3.bf16.msra.mxu1 %v1678_v11  ;;  %p1683_p2 = pneg %p1682_p1 }
  0x31   : > { %1541 = vmatmul.mubr.msk.bf16.gmra.mrb[4].mxu0 %vm447_vm0, %v419_v28  ;;  %p1690_p7 = pnand %p1689_p6, %p1683_p2 }
  0x32   : > { %1549 = vmatmul.mubr.msk.bf16.gmra.mrb[4].mxu1 %vm447_vm0, %v423_v29  ;;  %1576 = vmatprep.mubr.msk.bf16.mxu0 %vm447_vm0, %v416_v7 }
  0x33   : > { %1556 = vmatprep.mubr.msk.bf16.mxu1 %vm447_vm0, %v416_v7 }
  0x39   : > { %1577 = vmatmul.mubr.msk.bf16.vlgmr.msra.gmra.mrb[8].mxu0 %vm447_vm0, %v417_v13 }
  0x3a   : > { %1557 = vmatmul.mubr.msk.bf16.vlgmr.msra.gmra.mrb[8].mxu1 %vm447_vm0, %v417_v13  ;;  %1580 = vmatprep.mubr.msk.bf16.mxu0 %vm447_vm0, %v418_v21 }
  0x3b   : > { %1560 = vmatprep.mubr.msk.bf16.mxu1 %vm447_vm0, %v418_v21 }
  0x41   : > { %1581 = vmatmul.mubr.msk.bf16.gmra.mrb[12].mxu0 %vm447_vm0, %v419_v28 }
  0x42   : > { %1561 = vmatmul.mubr.msk.bf16.gmra.mrb[12].mxu1 %vm447_vm0, %v419_v28  ;;  %1584 = vmatprep.mubr.msk.bf16.mxu0 %vm447_vm0, %v420_v12 }
  0x43   : > { %1564 = vmatprep.mubr.msk.bf16.mxu1 %vm447_vm0, %v420_v12 }
  0x49   : > { %1585 = vmatmul.mubr.msk.bf16.gmra.mrb[16].mxu0 %vm447_vm0, %v421_v17 }
  0x4a   : > { %1565 = vmatmul.mubr.msk.bf16.gmra.mrb[16].mxu1 %vm447_vm0, %v421_v17  ;;  %1588 = vmatprep.mubr.msk.bf16.mxu0 %vm447_vm0, %v422_v22 }
  0x4b   : > { %1568 = vmatprep.mubr.msk.bf16.mxu1 %vm447_vm0, %v422_v22 }
  0x51   : > { %1589 = vmatmul.mubr.msk.bf16.gmra.mrb[20].mxu0 %vm447_vm0, %v423_v29 }
  0x52   : > { %1569 = vmatmul.mubr.msk.bf16.gmra.mrb[20].mxu1 %vm447_vm0, %v423_v29 }
  0xfc   : > { %v1538_v31 = vpop.f32.mrb[0].mxu0 }
  0xfd   : > { %v515_v32 = vadd.f32 %v1538_v31, %v1269_v30  ;;  %v1546_v33 = vpop.f32.mrb[0].mxu1  ;;  %v506_v34 = vpop.f32.mrb[1].mxu0 }
  0xfe   : > { %v538_v35 = vpop.f32.mrb[1].mxu1  ;;  %v1539_v36 = vpop.f32.mrb[2].mxu0  ;;  %v547_v40 = vadd.f32 %v1546_v33, %v1269_v30  ;;  %v507_v41 = vadd.f32 %v1269_v30, %v506_v34 }
  0xff   : > { %v518_v37 = vadd.f32 %v1539_v36, %v1269_v30  ;;  %v1547_v38 = vpop.f32.mrb[2].mxu1  ;;  %v509_v39 = vpop.f32.mrb[3].mxu0  ;;  %v539_v45 = vadd.f32 %v1269_v30, %v538_v35 }
 0x100   : > { %v550_v42 = vadd.f32 %v1547_v38, %v1269_v30  ;;  %v510_v43 = vadd.f32 %v1269_v30, %v509_v39  ;;  %v541_v44 = vpop.f32.mrb[3].mxu1 }
 0x101   : > { %v1416_v46 = vpack.c.bf16 %v518_v37, %v515_v32  ;;  %v542_v47 = vadd.f32 %v1269_v30, %v541_v44 }
 0x102   : > { %v1436_v48 = vpack.c.bf16 %v550_v42, %v547_v40  ;;  %v1411_v49 = vpack.c.bf16 %v510_v43, %v507_v41 }
 0x103   : > { %1488 = vst [vmem:[%s2016_s19 + $0x8] sm:$0xff] %v1416_v46   ;;  %v1431_v50 = vpack.c.bf16 %v542_v47, %v539_v45 }
 0x104   : > { %1492 = vst [vmem:[%s2016_s19 + $0x28] sm:$0xff] %v1436_v48   ;;  %1412 = vst [vmem:[%s2016_s19] sm:$0xff] %v1411_v49   ;;  %v1542_v51 = vpop.f32.mrb[4].mxu0 }
 0x105   : > { %1491 = vst [vmem:[%s2016_s19 + $0x20] sm:$0xff] %v1431_v50   ;;  %v531_v52 = vadd.f32 %v1542_v51, %v1269_v30  ;;  %v1550_v53 = vpop.f32.mrb[4].mxu1  ;;  %v522_v54 = vpop.f32.mrb[5].mxu0 }
 0x106   : > { %v554_v55 = vpop.f32.mrb[5].mxu1  ;;  %v1543_v56 = vpop.f32.mrb[6].mxu0  ;;  %v563_v60 = vadd.f32 %v1550_v53, %v1269_v30  ;;  %v523_v61 = vadd.f32 %v1269_v30, %v522_v54 }
 0x107   : > { %v534_v57 = vadd.f32 %v1543_v56, %v1269_v30  ;;  %v1551_v58 = vpop.f32.mrb[6].mxu1  ;;  %v525_v59 = vpop.f32.mrb[7].mxu0  ;;  %v555_v1 = vadd.f32 %v1269_v30, %v554_v55 }
 0x108   : > { %v566_v62 = vadd.f32 %v1551_v58, %v1269_v30  ;;  %v526_v63 = vadd.f32 %v1269_v30, %v525_v59  ;;  %v557_v0 = vpop.f32.mrb[7].mxu1 }
 0x109   : > { %v1426_v2 = vpack.c.bf16 %v534_v57, %v531_v52  ;;  %v558_v3 = vadd.f32 %v1269_v30, %v557_v0 }
 0x10a   : > { %v1446_v4 = vpack.c.bf16 %v566_v62, %v563_v60  ;;  %v1421_v5 = vpack.c.bf16 %v526_v63, %v523_v61 }
 0x10b   : > { %1490 = vst [vmem:[%s2016_s19 + $0x18] sm:$0xff] %v1426_v2   ;;  %v1441_v7 = vpack.c.bf16 %v558_v3, %v555_v1 }
 0x10c   : > { %1494 = vst [vmem:[%s2016_s19 + $0x38] sm:$0xff] %v1446_v4   ;;  %1489 = vst [vmem:[%s2016_s19 + $0x10] sm:$0xff] %v1421_v5   ;;  %v1578_v8 = vpop.f32.mrb[8].mxu0 }
 0x10d   : > { %1493 = vst [vmem:[%s2016_s19 + $0x30] sm:$0xff] %v1441_v7   ;;  %v1558_v9 = vpop.f32.mrb[8].mxu1  ;;  %v755_v11 = vadd.f32 %v1578_v8, %v2031_v6  ;;  %v746_v12 = vpop.f32.mrb[9].mxu0  ;;  %s1051_s19 = scalar_lea.sflag [#allocation3], %s2010_s12 }
 0x10e   : > { %v626_v13 = vpop.f32.mrb[9].mxu1  ;;  %v747_v14 = vadd.f32 %v2031_v6, %v746_v12  ;;  %v1579_v15 = vpop.f32.mrb[10].mxu0 }
 0x10f   : > { %1693 = shalt.err (!%p1690_p7)
}
 0x110   : > { %s1694_s20 = scalar_lea.hbm %s2038_s25, 1024  ;;  %s1698_s29 = scalar_lea.hbm %s2231_s7, 4096 }
 0x111   : > { %p1695_p9 = scmp.ne.s32.totalorder %s2038_s25, %s1694_s20  ;;  %p1699_p12 = scmp.lt.u32.totalorder %s2038_s25, %s2231_s7 }
 0x112   : > { %p1700_p13 = scmp.lt.u32.totalorder %s1698_s29, %s1694_s20  ;;  %p1702_p1 = scmp.lt.u32.totalorder %s1694_s20, %s2038_s25 }
 0x113   : > { %p1696_p10 = pnand %p1695_p9, %p1913_p3 }
 0x114   : > { %p1701_p0 = por %p1700_p13, %p1699_p12 }
 0x115   : > { %p1697_p11 = pneg %p1696_p10 }
 0x116   : > { %p1703_p2 = por %p1702_p1, %p1701_p0 }
 0x118   : > { %p1704_p4 = pnand %p1703_p2, %p1697_p11 }
 0x11a   : > { %1707 = shalt.err (!%p1704_p4)
}
 0x11b   : > { %s1809_s15 = smov 64   ;;  %s1810_s17 = smov 4   ;;  %v1394_v16 = vpack.c.bf16 %v755_v11, %v755_v11  ;;  %v1559_v17 = vpop.f32.mrb[10].mxu1  ;;  %v758_v18 = vadd.f32 %v1579_v15, %v2031_v6  ;;  %v749_v19 = vpop.f32.mrb[11].mxu0  ;;  %v635_v20 = vadd.f32 %v1558_v9, %v2049_v10  ;;  %v1392_v21 = vpack.c.bf16 %v747_v14, %v747_v14 }
 0x11c   : > { %1596 = dma.vmem_to_hbm [thread:$0]  (%p1913_p3), %s2040_s1, 1024, %s2038_s25, %s1051_s19, %s1809_s15, %s1809_s15, %s1810_s17   ;;  %v638_v22 = vadd.f32 %v1559_v17, %v2049_v10  ;;  %v629_v23 = vpop.f32.mrb[11].mxu1  ;;  %v750_v24 = vadd.f32 %v2031_v6, %v749_v19  ;;  %v627_v25 = vadd.f32 %v2049_v10, %v626_v13  ;;  %v1582_v31 = vpop.f32.mrb[12].mxu0 }
 0x11d   : > { %1036 = vst.msk [vmem:[%s2054_s24 + $0x8] sm:$0xf] %vm1033_vm1, %v1394_v16  ;;  %v1395_v26 = vpack.c.bf16 %v758_v18, %v758_v18  ;;  %v630_v27 = vadd.f32 %v2049_v10, %v629_v23  ;;  %1034 = vst.msk [vmem:[%s2054_s24] sm:$0xf] %vm1033_vm1, %v1392_v21  ;;  %s2246_s26 = sshll.u32 %s2010_s12, 6  ;;  %v1562_v32 = vpop.f32.mrb[12].mxu1  ;;  %v771_v33 = vadd.f32 %v1582_v31, %v2031_v6 }
 0x11e   : > { %v1456_v28 = vpack.c.bf16 %v638_v22, %v635_v20  ;;  %v1393_v29 = vpack.c.bf16 %v750_v24, %v750_v24  ;;  %s2099_s13 = scalar_lea.vmem [#allocation4], %s2246_s26  ;;  %v762_v34 = vpop.f32.mrb[13].mxu0  ;;  %v642_v35 = vpop.f32.mrb[13].mxu1  ;;  %v651_v42 = vadd.f32 %v1562_v32, %v2049_v10  ;;  %s2247_s25 = sshll.u32 %s2022_s18, 6 }
 0x11f   : > { %1037 = vst.msk [vmem:[%s2054_s24 + $0xc] sm:$0xf] %vm1033_vm1, %v1395_v26  ;;  %v1451_v30 = vpack.c.bf16 %v630_v27, %v627_v25  ;;  %v763_v36 = vadd.f32 %v2031_v6, %v762_v34  ;;  %v1583_v37 = vpop.f32.mrb[14].mxu0  ;;  %v1398_v38 = vpack.c.bf16 %v771_v33, %v771_v33  ;;  %v1563_v39 = vpop.f32.mrb[14].mxu1  ;;  %v643_v47 = vadd.f32 %v2049_v10, %v642_v35  ;;  %s1098_s1 = sshll.u32 %s2099_s13, 4  ;;  %s2161_s21 = scalar_lea.hbm %s2232_s8, %s2247_s25  ;;  %s2163_s1 = int_to_ptr.vmem [resolvable:$true] %s1098_s1 }
 0x120   : > { %1495 = vst [vmem:[%s2099_s13 + $0x8] sm:$0xff] %v1456_v28   ;;  %1035 = vst.msk [vmem:[%s2054_s24 + $0x4] sm:$0xf] %vm1033_vm1, %v1393_v29  ;;  %v774_v40 = vadd.f32 %v1583_v37, %v2031_v6  ;;  %v765_v41 = vpop.f32.mrb[15].mxu0  ;;  %v654_v44 = vadd.f32 %v1563_v39, %v2049_v10  ;;  %v645_v45 = vpop.f32.mrb[15].mxu1  ;;  %s1056_s29 = scalar_lea.sflag [#allocation5], %s2010_s12 }
 0x121   : > { %1452 = vst [vmem:[%s2099_s13] sm:$0xff] %v1451_v30   ;;  %v1396_v43 = vpack.c.bf16 %v763_v36, %v763_v36  ;;  %v766_v46 = vadd.f32 %v2031_v6, %v765_v41  ;;  %1040 = vst.msk [vmem:[%s2054_s24 + $0x18] sm:$0xf] %vm1033_vm1, %v1398_v38  ;;  %v646_v49 = vadd.f32 %v2049_v10, %v645_v45  ;;  %v1586_v53 = vpop.f32.mrb[16].mxu0  ;;  %v1566_v54 = vpop.f32.mrb[16].mxu1  ;;  %s1708_s28 = scalar_lea.vmem %s2163_s1, 1024  ;;  %s1811_s18 = smov [#allocation4]  }
 0x122   : > { %v1399_v48 = vpack.c.bf16 %v774_v40, %v774_v40  ;;  %v1466_v50 = vpack.c.bf16 %v654_v44, %v651_v42  ;;  %v787_v55 = vadd.f32 %v1586_v53, %v2031_v6  ;;  %v778_v56 = vpop.f32.mrb[17].mxu0  ;;  %v658_v57 = vpop.f32.mrb[17].mxu1  ;;  %v667_v0 = vadd.f32 %v1566_v54, %v2049_v10  ;;  %p1709_p5 = scmp.ne.s32.totalorder %s2163_s1, %s1708_s28  ;;  %s1712_s26 = sshll.u32 %s1811_s18, 4  ;;  %s1713_s26 = int_to_ptr.vmem [resolvable:$false] %s1712_s26 }
 0x123   : > { %1038 = vst.msk [vmem:[%s2054_s24 + $0x10] sm:$0xf] %vm1033_vm1, %v1396_v43  ;;  %v1397_v51 = vpack.c.bf16 %v766_v46, %v766_v46  ;;  %v1461_v52 = vpack.c.bf16 %v646_v49, %v643_v47  ;;  %v779_v58 = vadd.f32 %v2031_v6, %v778_v56  ;;  %v1587_v59 = vpop.f32.mrb[18].mxu0  ;;  %v1567_v61 = vpop.f32.mrb[18].mxu1  ;;  %v659_v5 = vadd.f32 %v2049_v10, %v658_v57  ;;  %s1714_s25 = scalar_lea.vmem %s1713_s26, 2048  ;;  %p1715_p9 = scmp.lt.s32.totalorder %s2163_s1, %s1713_s26 }
 0x124   : > { %1041 = vst.msk [vmem:[%s2054_s24 + $0x1c] sm:$0xf] %vm1033_vm1, %v1399_v48  ;;  %1497 = vst [vmem:[%s2099_s13 + $0x18] sm:$0xff] %v1466_v50   ;;  %v1402_v60 = vpack.c.bf16 %v787_v55, %v787_v55  ;;  %v790_v62 = vadd.f32 %v1587_v59, %v2031_v6  ;;  %v781_v63 = vpop.f32.mrb[19].mxu0  ;;  %v670_v2 = vadd.f32 %v1567_v61, %v2049_v10  ;;  %v661_v3 = vpop.f32.mrb[19].mxu1  ;;  %p1710_p6 = pnand %p1709_p5, %p1913_p3  ;;  %p1716_p10 = scmp.lt.s32.totalorder %s1714_s25, %s1708_s28 }
 0x125   : > { %1039 = vst.msk [vmem:[%s2054_s24 + $0x14] sm:$0xf] %vm1033_vm1, %v1397_v51  ;;  %1496 = vst [vmem:[%s2099_s13 + $0x10] sm:$0xff] %v1461_v52   ;;  %v1400_v1 = vpack.c.bf16 %v779_v58, %v779_v58  ;;  %v782_v4 = vadd.f32 %v2031_v6, %v781_v63  ;;  %v662_v8 = vadd.f32 %v2049_v10, %v661_v3  ;;  %v1590_v13 = vpop.f32.mrb[20].mxu0  ;;  %v1570_v14 = vpop.f32.mrb[20].mxu1 }
 0x126   : > { %1044 = vst.msk [vmem:[%s2054_s24 + $0x28] sm:$0xf] %vm1033_vm1, %v1402_v60  ;;  %v1403_v7 = vpack.c.bf16 %v790_v62, %v790_v62  ;;  %v1476_v9 = vpack.c.bf16 %v670_v2, %v667_v0  ;;  %v803_v15 = vadd.f32 %v1590_v13, %v2031_v6  ;;  %v794_v16 = vpop.f32.mrb[21].mxu0  ;;  %v674_v17 = vpop.f32.mrb[21].mxu1  ;;  %v683_v24 = vadd.f32 %v1570_v14, %v2049_v10  ;;  %p1711_p7 = pneg %p1710_p6  ;;  %p1717_p11 = por %p1716_p10, %p1715_p9 }
 0x127   : > { %1042 = vst.msk [vmem:[%s2054_s24 + $0x20] sm:$0xf] %vm1033_vm1, %v1400_v1  ;;  %v1401_v11 = vpack.c.bf16 %v782_v4, %v782_v4  ;;  %v1471_v12 = vpack.c.bf16 %v662_v8, %v659_v5  ;;  %v795_v18 = vadd.f32 %v2031_v6, %v794_v16  ;;  %v1591_v19 = vpop.f32.mrb[22].mxu0  ;;  %v1571_v21 = vpop.f32.mrb[22].mxu1  ;;  %v675_v29 = vadd.f32 %v2049_v10, %v674_v17 }
 0x128   : > { %1045 = vst.msk [vmem:[%s2054_s24 + $0x2c] sm:$0xf] %vm1033_vm1, %v1403_v7  ;;  %1499 = vst [vmem:[%s2099_s13 + $0x28] sm:$0xff] %v1476_v9   ;;  %v1406_v20 = vpack.c.bf16 %v803_v15, %v803_v15  ;;  %v806_v22 = vadd.f32 %v1591_v19, %v2031_v6  ;;  %v797_v23 = vpop.f32.mrb[23].mxu0  ;;  %v686_v26 = vadd.f32 %v1571_v21, %v2049_v10  ;;  %v677_v27 = vpop.f32.mrb[23].mxu1  ;;  %p1718_p12 = pnand %p1717_p11, %p1711_p7 }
 0x129   : > { %1043 = vst.msk [vmem:[%s2054_s24 + $0x24] sm:$0xf] %vm1033_vm1, %v1401_v11  ;;  %1498 = vst [vmem:[%s2099_s13 + $0x20] sm:$0xff] %v1471_v12   ;;  %v1404_v25 = vpack.c.bf16 %v795_v18, %v795_v18  ;;  %v798_v28 = vadd.f32 %v2031_v6, %v797_v23  ;;  %v678_v31 = vadd.f32 %v2049_v10, %v677_v27 }
 0x12a   : > { %1048 = vst.msk [vmem:[%s2054_s24 + $0x38] sm:$0xf] %vm1033_vm1, %v1406_v20  ;;  %v1407_v30 = vpack.c.bf16 %v806_v22, %v806_v22  ;;  %v1486_v32 = vpack.c.bf16 %v686_v26, %v683_v24 }
 0x12b   : > { %1046 = vst.msk [vmem:[%s2054_s24 + $0x30] sm:$0xf] %vm1033_vm1, %v1404_v25  ;;  %v1405_v33 = vpack.c.bf16 %v798_v28, %v798_v28  ;;  %v1481_v34 = vpack.c.bf16 %v678_v31, %v675_v29 }
 0x12c   : > { %1049 = vst.msk [vmem:[%s2054_s24 + $0x3c] sm:$0xf] %vm1033_vm1, %v1407_v30  ;;  %1501 = vst [vmem:[%s2099_s13 + $0x38] sm:$0xff] %v1486_v32  }
 0x12d   : > { %1047 = vst.msk [vmem:[%s2054_s24 + $0x34] sm:$0xf] %vm1033_vm1, %v1405_v33  ;;  %1500 = vst [vmem:[%s2099_s13 + $0x30] sm:$0xff] %v1481_v34  }
 0x12e   : > { %1721 = shalt.err (!%p1718_p12)
}
 0x12f   : > { %s1722_s24 = scalar_lea.hbm %s2161_s21, 1024  ;;  %s1726_s20 = scalar_lea.hbm %s2232_s8, 4096 }
 0x130   : > { %p1723_p13 = scmp.ne.s32.totalorder %s2161_s21, %s1722_s24  ;;  %p1727_p2 = scmp.lt.u32.totalorder %s2161_s21, %s2232_s8 }
 0x131   : > { %p1728_p4 = scmp.lt.u32.totalorder %s1726_s20, %s1722_s24  ;;  %p1730_p6 = scmp.lt.u32.totalorder %s1722_s24, %s2161_s21 }
 0x132   : > { %p1724_p0 = pnand %p1723_p13, %p1913_p3 }
 0x133   : > { %p1729_p5 = por %p1728_p4, %p1727_p2 }
 0x134   : > { %p1725_p1 = pneg %p1724_p0 }
 0x135   : > { %p1731_p7 = por %p1730_p6, %p1729_p5 }
 0x137   : > { %p1732_p9 = pnand %p1731_p7, %p1725_p1 }
 0x139   : > { %1735 = shalt.err (!%p1732_p9)
}
 0x13a   : > { %1597 = dma.vmem_to_hbm [thread:$0]  (%p1913_p3), %s2163_s1, 1024, %s2161_s21, %s1056_s29, %s1809_s15, %s1809_s15, %s1810_s17  }
 0x13b PF: > { %p1607_p10 = scmp.ge.s32.totalorder %s1806_s16, 2  ;;  %s1117_s28 = sand.u32 1, %s1778_s30  }
 0x13c   : > { %s1118_s25 = scalar_lea.sflag [#allocation3], %s1117_s28 }
 0x13d   : > { %p1601_p11 = pnand %p1607_p10, %p1922_p8 }
 0x13f   : > { %1769 = dma.done.wait (!%p1601_p11), %s1118_s25, 1024  }
 0x140   : > { %1771 = vsyncadd (!%p1601_p11), %s1118_s25, 4294966272  ;;  %s1127_s22 = scalar_lea.sflag [#allocation5], %s1117_s28 }
 0x141   : > { %1773 = dma.done.wait (!%p1601_p11), %s1127_s22, 1024  }
 0x142   : > { %1775 = vsyncadd (!%p1601_p11), %s1127_s22, 4294966272  ;;  %s26_s16 = sadd.s32 1, %s1806_s16   ;;  %s2248_s13 = sld [smem:[#allocation8_spill]] }
 0x143   : > { %p23_p12 = scmp.ge.s32.totalorder %s26_s16, 6   ;;  %s2249_s15 = sld [smem:[#allocation9_spill]] }
 0x144   : > { %s2250_s17 = sld [smem:[#allocation10_spill]]  ;;  %s2251_s30 = smov %s1782_s10 }
 0x145   : > { %s2252_s10 = smov %s1786_s11  ;;  %s2253_s11 = smov %s1931_s27 }
 0x146   : > { %s2254_s12 = smov %s1798_s14  ;;  %25 = sbr.rel (!%p23_p12) target bundleno = 9 (0x9), region = 112 }
 0x149   : > { %s2255_s14 = smov %s2249_s15 }
 0x14a   : > { %s2256_s15 = smov %s2250_s17 }
 0x14d   :  { %1144 = vsyncpa [#allocation3], 1 }
 0x14e   :  { %1146 = vsyncpa [#allocation3 + $0x1], 1 }
 0x14f   :  { %1147 = vsyncpa [#allocation5], 1 }
 0x150   :  { %1149 = vsyncpa [#allocation5 + $0x1], 1 }

</bundles_post_ra>
